<compile_context>
chip_gen: v7x
topology: tpu7x:2x2x1
jax: 0.10.0
libtpu: 0.0.40
codegen_flags: <defaults>
</compile_context>

<pallas_src>
import math
import functools

import jax
import jax.numpy as jnp
from jax import lax
from jax.experimental import pallas as pl
from jax.experimental.pallas import tpu as pltpu


# --------------------------------------------------------------------------
# Fused MHA kernel: one batch element per grid step.
# --------------------------------------------------------------------------
def _mha_kernel(*refs, n_head, d_k, mask_mode, compute_dtype):
    """refs (mask_mode == "dense"):
         xq, xk, xv, mask, wq_t, wk_t, wv_t, wo_t, bq, bk, bv, bo, out
       refs (otherwise):
         xq, xk, xv,       wq_t, wk_t, wv_t, wo_t, bq, bk, bv, bo, out
    """
    if mask_mode == "dense":
        (xq_ref, xk_ref, xv_ref, m_ref,
         wq_ref, wk_ref, wv_ref, wo_ref,
         bq_ref, bk_ref, bv_ref, bo_ref, o_ref) = refs
    else:
        (xq_ref, xk_ref, xv_ref,
         wq_ref, wk_ref, wv_ref, wo_ref,
         bq_ref, bk_ref, bv_ref, bo_ref, o_ref) = refs
        m_ref = None

    cdt = compute_dtype
    _, S, d_model = xq_ref.shape

    xq = xq_ref[0]                       # (S, d_model), compute dtype
    xk = xk_ref[0]
    xv = xv_ref[0]

    # Projections. 1/sqrt(d_k) is already folded into wq/bq on the host.
    # f32 accumulation on the MXU, operands stay in compute dtype.
    q = (jnp.dot(xq, wq_ref[...], preferred_element_type=jnp.float32)
         + bq_ref[...]).astype(cdt)
    k = (jnp.dot(xk, wk_ref[...], preferred_element_type=jnp.float32)
         + bk_ref[...]).astype(cdt)
    v = (jnp.dot(xv, wv_ref[...], preferred_element_type=jnp.float32)
         + bv_ref[...]).astype(cdt)

    # keep-mask (True = attend), shared across heads.
    if mask_mode == "dense":
        keep = m_ref[0].astype(jnp.float32) != 0.0                 # (S, S)
    elif mask_mode == "causal":
        row = lax.broadcasted_iota(jnp.int32, (S, S), 0)
        col = lax.broadcasted_iota(jnp.int32, (S, S), 1)
        keep = row >= col                                          # (S, S)
    else:
        keep = None

    ctx_heads = []
    for h in range(n_head):                       # static unroll over heads
        sl = slice(h * d_k, (h + 1) * d_k)
        qh = q[:, sl]                             # (S, d_k) lane slice
        kh = k[:, sl]
        vh = v[:, sl]

        # scores = qh @ kh^T : contract last dims of both, no explicit k.T.
        s = lax.dot_general(qh, kh, (((1,), (1,)), ((), ())),
                            preferred_element_type=jnp.float32)    # (S, S) f32
        if keep is not None:
            s = jnp.where(keep, s, jnp.float32(-1e9))

        # Numerically-stable softmax in f32; reciprocal on the EUP slot.
        s = s - jnp.max(s, axis=-1, keepdims=True)
        p = jnp.exp(s)
        attn = p * pl.reciprocal(jnp.sum(p, axis=-1, keepdims=True), approx=True)
        # TODO(synk): training-mode dropout on `attn` not implemented (eval identity).

        ctx_heads.append(
            jnp.dot(attn.astype(cdt), vh, preferred_element_type=jnp.float32))

    # Lane-dense (S, d_model) context (== torch transpose(1,2).view(...)).
    ctx = jnp.concatenate(ctx_heads, axis=-1).astype(cdt)

    out = jnp.dot(ctx, wo_ref[...], preferred_element_type=jnp.float32) + bo_ref[...]
    o_ref[0] = out.astype(o_ref.dtype)


# --------------------------------------------------------------------------
# Wrapper: full MultiHeadedAttention forward in one pallas_call.
# --------------------------------------------------------------------------
def multi_headed_attention(params, query, key, value, mask=None, *,
                           causal=False, compute_dtype=jnp.float32):
    """query/key/value: [B, S, d_model]; mask: None or [B, S, S] (nonzero = keep).
    If mask is None and causal=True, a causal mask is generated in-kernel."""
    B, S, d_model = query.shape
    n_head = int(params["n_head"])
    d_k = d_model // n_head
    out_dtype = query.dtype

    # Fold the 1/sqrt(d_k) attention scale into the Q projection (free at runtime).
    scale = 1.0 / math.sqrt(d_k)
    wq_t = (params["w_q"] * scale).T.astype(compute_dtype)   # [d_in, d_out]
    wk_t = params["w_k"].T.astype(compute_dtype)
    wv_t = params["w_v"].T.astype(compute_dtype)
    wo_t = params["w_o"].T.astype(compute_dtype)
    bq = (params["b_q"] * scale).reshape(1, d_model).astype(jnp.float32)
    bk = params["b_k"].reshape(1, d_model).astype(jnp.float32)
    bv = params["b_v"].reshape(1, d_model).astype(jnp.float32)
    bo = params["b_o"].reshape(1, d_model).astype(jnp.float32)

    xq = query.astype(compute_dtype)
    xk = key.astype(compute_dtype)
    xv = value.astype(compute_dtype)

    if mask is not None:
        mask_mode = "dense"
        mask8 = mask.reshape(B, S, S).astype(jnp.int8)        # 4x less HBM traffic
    elif causal:
        mask_mode = "causal"
        mask8 = None
    else:
        mask_mode = "none"
        mask8 = None

    x_spec = pl.BlockSpec((1, S, d_model), lambda b: (b, 0, 0))
    w_spec = pl.BlockSpec((d_model, d_model), lambda b: (0, 0))
    b_spec = pl.BlockSpec((1, d_model), lambda b: (0, 0))

    in_specs = [x_spec, x_spec, x_spec]
    args = [xq, xk, xv]
    if mask_mode == "dense":
        in_specs.append(pl.BlockSpec((1, S, S), lambda b: (b, 0, 0)))
        args.append(mask8)
    in_specs += [w_spec] * 4 + [b_spec] * 4
    args += [wq_t, wk_t, wv_t, wo_t, bq, bk, bv, bo]

    kernel = functools.partial(_mha_kernel, n_head=n_head, d_k=d_k,
                               mask_mode=mask_mode, compute_dtype=compute_dtype)

    itemsize = jnp.dtype(compute_dtype).itemsize
    flops = (4 * 2 * B * S * d_model * d_model          # four linear projections
             + 2 * 2 * B * n_head * S * S * d_k)        # QK^T and attn@V
    bytes_accessed = (3 * B * S * d_model * itemsize
                      + 4 * d_model * d_model * itemsize
                      + 4 * d_model * 4
                      + (B * S * S if mask_mode == "dense" else 0)
                      + B * S * d_model * jnp.dtype(out_dtype).itemsize)
    cost = pl.CostEstimate(flops=int(flops),
                           transcendentals=int(B * n_head * S * S),
                           bytes_accessed=int(bytes_accessed))

    return pl.pallas_call(
        kernel,
        out_shape=jax.ShapeDtypeStruct((B, S, d_model), out_dtype),
        grid=(B,),
        in_specs=in_specs,
        out_specs=pl.BlockSpec((1, S, d_model), lambda b: (b, 0, 0)),
        compiler_params=pltpu.CompilerParams(
            dimension_semantics=("parallel",),
            vmem_limit_bytes=32 * 1024 * 1024,
        ),
        cost_estimate=cost,
    )(*args)


# --------------------------------------------------------------------------
# Pure-JAX reference (matches the PyTorch module, eval mode).
# --------------------------------------------------------------------------
def _reference(params, query, key, value, mask=None):
    B, S, d_model = query.shape
    n_head = int(params["n_head"])
    d_k = d_model // n_head

    def proj(x, w, b):
        y = x @ w.T + b
        return jnp.transpose(y.reshape(B, S, n_head, d_k), (0, 2, 1, 3))

    q = proj(query, params["w_q"], params["b_q"])
    k = proj(key, params["w_k"], params["b_k"])
    v = proj(value, params["w_v"], params["b_v"])
    score = jnp.einsum("bhqd,bhkd->bhqk", q, k) / math.sqrt(d_k)
    if mask is not None:
        m = mask.reshape(B, 1, S, S)
        score = jnp.where(m == 0, -1e9, score)
    attn = jax.nn.softmax(score, axis=-1)
    out = jnp.einsum("bhqk,bhkd->bhqd", attn, v)
    out = jnp.transpose(out, (0, 2, 1, 3)).reshape(B, S, d_model)
    return out @ params["w_o"].T + params["b_o"]


def init_params(key, d_model, n_head):
    ks = jax.random.split(key, 8)
    scale = 1.0 / math.sqrt(d_model)

    def w(k):
        return (jax.random.uniform(k, (d_model, d_model), jnp.float32) * 2 - 1) * scale

    def b(k):
        return (jax.random.uniform(k, (d_model,), jnp.float32) * 2 - 1) * scale

    return {
        "n_head": n_head,
        "w_q": w(ks[0]), "b_q": b(ks[1]),
        "w_k": w(ks[2]), "b_k": b(ks[3]),
        "w_v": w(ks[4]), "b_v": b(ks[5]),
        "w_o": w(ks[6]), "b_o": b(ks[7]),
    }


if __name__ == "__main__":
    B, S, d_model, n_head = 2, 8, 32, 4
    root = jax.random.PRNGKey(0)
    k_p, k_q, k_k, k_v = jax.random.split(root, 4)

    params = init_params(k_p, d_model, n_head)
    query = jax.random.normal(k_q, (B, S, d_model), jnp.float32)
    key = jax.random.normal(k_k, (B, S, d_model), jnp.float32)
    value = jax.random.normal(k_v, (B, S, d_model), jnp.float32)

    # causal mask, shape [B, S, S], nonzero = attend
    mask = jnp.broadcast_to(jnp.tril(jnp.ones((S, S), jnp.int32)), (B, S, S))
    ref = _reference(params, query, key, value, mask)

    # 1) explicit int8 mask, f32 compute
    out = jax.block_until_ready(
        multi_headed_attention(params, query, key, value, mask))
    assert out.shape == (B, S, d_model)
    assert jnp.allclose(out, ref, atol=5e-3, rtol=5e-3)

    # 2) causal mask generated in-kernel (no mask DMA) — same math as the tril mask
    out_c = jax.block_until_ready(
        multi_headed_attention(params, query, key, value, mask=None, causal=True))
    assert jnp.allclose(out_c, ref, atol=5e-3, rtol=5e-3)

    # 3) no mask at all (mask path skipped entirely)
    out_n = jax.block_until_ready(
        multi_headed_attention(params, query, key, value, mask=None))
    ref_n = _reference(params, query, key, value, None)
    assert jnp.allclose(out_n, ref_n, atol=5e-3, rtol=5e-3)

    # 4) bf16 MXU operands with f32 accumulation (v6e/v7x fast path)
    out_bf = jax.block_until_ready(
        multi_headed_attention(params, query, key, value, mask,
                               compute_dtype=jnp.bfloat16))
    assert jnp.allclose(out_bf, ref, atol=5e-2, rtol=5e-2)

    print("KERNEL_OK")
</pallas_src>

<mosaic_0001>
module attributes {stable_mosaic.version = 11 : i64} {
  func.func @_mha_kernel(%arg0: i32, %arg1: memref<1x8x32xf32, #tpu.memory_space<vmem>>, %arg2: memref<1x8x32xf32, #tpu.memory_space<vmem>>, %arg3: memref<1x8x32xf32, #tpu.memory_space<vmem>>, %arg4: memref<1x8x8xi8, #tpu.memory_space<vmem>>, %arg5: memref<32x32xf32, #tpu.memory_space<vmem>>, %arg6: memref<32x32xf32, #tpu.memory_space<vmem>>, %arg7: memref<32x32xf32, #tpu.memory_space<vmem>>, %arg8: memref<32x32xf32, #tpu.memory_space<vmem>>, %arg9: memref<1x32xf32, #tpu.memory_space<vmem>>, %arg10: memref<1x32xf32, #tpu.memory_space<vmem>>, %arg11: memref<1x32xf32, #tpu.memory_space<vmem>>, %arg12: memref<1x32xf32, #tpu.memory_space<vmem>>, %arg13: memref<1x8x32xf32, #tpu.memory_space<vmem>>) attributes {dimension_semantics = [#tpu.dimension_semantics<parallel>], iteration_bounds = array<i64: 2>, scalar_prefetch = 0 : i64, scratch_operands = 0 : i64, tpu.core_type = #tpu.core_type<tc>, window_params = [{transform_indices = @transform_0, window_bounds = array<i64: 1, 8, 32>}, {transform_indices = @transform_1, window_bounds = array<i64: 1, 8, 32>}, {transform_indices = @transform_2, window_bounds = array<i64: 1, 8, 32>}, {transform_indices = @transform_3, window_bounds = array<i64: 1, 8, 8>}, {pipeline_mode = #tpu.pipeline_mode<synchronous>, transform_indices = @transform_4, window_bounds = array<i64: 32, 32>}, {pipeline_mode = #tpu.pipeline_mode<synchronous>, transform_indices = @transform_5, window_bounds = array<i64: 32, 32>}, {pipeline_mode = #tpu.pipeline_mode<synchronous>, transform_indices = @transform_6, window_bounds = array<i64: 32, 32>}, {pipeline_mode = #tpu.pipeline_mode<synchronous>, transform_indices = @transform_7, window_bounds = array<i64: 32, 32>}, {pipeline_mode = #tpu.pipeline_mode<synchronous>, transform_indices = @transform_8, window_bounds = array<i64: 1, 32>}, {pipeline_mode = #tpu.pipeline_mode<synchronous>, transform_indices = @transform_9, window_bounds = array<i64: 1, 32>}, {pipeline_mode = #tpu.pipeline_mode<synchronous>, transform_indices = @transform_10, window_bounds = array<i64: 1, 32>}, {pipeline_mode = #tpu.pipeline_mode<synchronous>, transform_indices = @transform_11, window_bounds = array<i64: 1, 32>}, {transform_indices = @transform_12, window_bounds = array<i64: 1, 8, 32>}]} {
    %c0 = arith.constant 0 : index
    %c0_0 = arith.constant 0 : index
    %c0_1 = arith.constant 0 : index
    %0 = vector.load %arg1[%c0, %c0_0, %c0_1] : memref<1x8x32xf32, #tpu.memory_space<vmem>>, vector<1x8x32xf32>
    %1 = vector.shape_cast %0 : vector<1x8x32xf32> to vector<8x32xf32>
    %c0_2 = arith.constant 0 : index
    %c0_3 = arith.constant 0 : index
    %c0_4 = arith.constant 0 : index
    %2 = vector.load %arg2[%c0_2, %c0_3, %c0_4] : memref<1x8x32xf32, #tpu.memory_space<vmem>>, vector<1x8x32xf32>
    %3 = vector.shape_cast %2 : vector<1x8x32xf32> to vector<8x32xf32>
    %c0_5 = arith.constant 0 : index
    %c0_6 = arith.constant 0 : index
    %c0_7 = arith.constant 0 : index
    %4 = vector.load %arg3[%c0_5, %c0_6, %c0_7] : memref<1x8x32xf32, #tpu.memory_space<vmem>>, vector<1x8x32xf32>
    %5 = vector.shape_cast %4 : vector<1x8x32xf32> to vector<8x32xf32>
    %c0_8 = arith.constant 0 : index
    %c0_9 = arith.constant 0 : index
    %6 = vector.load %arg5[%c0_8, %c0_9] : memref<32x32xf32, #tpu.memory_space<vmem>>, vector<32x32xf32>
    %cst = arith.constant dense<0.000000e+00> : vector<8x32xf32>
    %7 = tpu.matmul %1, %6, %cst {dimension_numbers = #tpu.dot_dimension_numbers<[1], [0], [0], [1], [0, 0, 1, 1], [], []>} : vector<8x32xf32>, vector<32x32xf32>, vector<8x32xf32> -> vector<8x32xf32>
    %c0_10 = arith.constant 0 : index
    %c0_11 = arith.constant 0 : index
    %8 = vector.load %arg9[%c0_10, %c0_11] : memref<1x32xf32, #tpu.memory_space<vmem>>, vector<1x32xf32>
    %9 = vector.broadcast %8 : vector<1x32xf32> to vector<8x32xf32>
    %10 = arith.addf %7, %9 : vector<8x32xf32>
    %c0_12 = arith.constant 0 : index
    %c0_13 = arith.constant 0 : index
    %11 = vector.load %arg6[%c0_12, %c0_13] : memref<32x32xf32, #tpu.memory_space<vmem>>, vector<32x32xf32>
    %cst_14 = arith.constant dense<0.000000e+00> : vector<8x32xf32>
    %12 = tpu.matmul %3, %11, %cst_14 {dimension_numbers = #tpu.dot_dimension_numbers<[1], [0], [0], [1], [0, 0, 1, 1], [], []>} : vector<8x32xf32>, vector<32x32xf32>, vector<8x32xf32> -> vector<8x32xf32>
    %c0_15 = arith.constant 0 : index
    %c0_16 = arith.constant 0 : index
    %13 = vector.load %arg10[%c0_15, %c0_16] : memref<1x32xf32, #tpu.memory_space<vmem>>, vector<1x32xf32>
    %14 = vector.broadcast %13 : vector<1x32xf32> to vector<8x32xf32>
    %15 = arith.addf %12, %14 : vector<8x32xf32>
    %c0_17 = arith.constant 0 : index
    %c0_18 = arith.constant 0 : index
    %16 = vector.load %arg7[%c0_17, %c0_18] : memref<32x32xf32, #tpu.memory_space<vmem>>, vector<32x32xf32>
    %cst_19 = arith.constant dense<0.000000e+00> : vector<8x32xf32>
    %17 = tpu.matmul %5, %16, %cst_19 {dimension_numbers = #tpu.dot_dimension_numbers<[1], [0], [0], [1], [0, 0, 1, 1], [], []>} : vector<8x32xf32>, vector<32x32xf32>, vector<8x32xf32> -> vector<8x32xf32>
    %c0_20 = arith.constant 0 : index
    %c0_21 = arith.constant 0 : index
    %18 = vector.load %arg11[%c0_20, %c0_21] : memref<1x32xf32, #tpu.memory_space<vmem>>, vector<1x32xf32>
    %19 = vector.broadcast %18 : vector<1x32xf32> to vector<8x32xf32>
    %20 = arith.addf %17, %19 : vector<8x32xf32>
    %c0_22 = arith.constant 0 : index
    %c0_23 = arith.constant 0 : index
    %c0_24 = arith.constant 0 : index
    %21 = vector.load %arg4[%c0_22, %c0_23, %c0_24] : memref<1x8x8xi8, #tpu.memory_space<vmem>>, vector<1x8x8xi8>
    %22 = vector.shape_cast %21 : vector<1x8x8xi8> to vector<8x8xi8>
    %23 = arith.sitofp %22 : vector<8x8xi8> to vector<8x8xf32>
    %cst_25 = arith.constant 0.000000e+00 : f32
    %24 = vector.broadcast %cst_25 : f32 to vector<8x8xf32>
    %25 = arith.cmpf one, %23, %24 : vector<8x8xf32>
    %26 = vector.extract_strided_slice %10 {offsets = [0, 0], sizes = [8, 8], strides = [1, 1]} : vector<8x32xf32> to vector<8x8xf32>
    %27 = vector.extract_strided_slice %15 {offsets = [0, 0], sizes = [8, 8], strides = [1, 1]} : vector<8x32xf32> to vector<8x8xf32>
    %28 = vector.extract_strided_slice %20 {offsets = [0, 0], sizes = [8, 8], strides = [1, 1]} : vector<8x32xf32> to vector<8x8xf32>
    %cst_26 = arith.constant dense<0.000000e+00> : vector<8x8xf32>
    %29 = tpu.matmul %26, %27, %cst_26 {dimension_numbers = #tpu.dot_dimension_numbers<[1], [1], [0], [0], [0, 0, 1, 0], [], []>} : vector<8x8xf32>, vector<8x8xf32>, vector<8x8xf32> -> vector<8x8xf32>
    %cst_27 = arith.constant -1.000000e+09 : f32
    %30 = vector.broadcast %cst_27 : f32 to vector<8x8xf32>
    %31 = arith.select %25, %29, %30 : vector<8x8xi1>, vector<8x8xf32>
    %cst_28 = arith.constant dense<0xFF800000> : vector<8xf32>
    %32 = vector.multi_reduction <maximumf>, %31, %cst_28 [1] : vector<8x8xf32> to vector<8xf32>
    %33 = vector.shape_cast %32 : vector<8xf32> to vector<8x1xf32>
    %34 = vector.broadcast %33 : vector<8x1xf32> to vector<8x8xf32>
    %35 = arith.subf %31, %34 : vector<8x8xf32>
    %36 = math.exp %35 : vector<8x8xf32>
    %cst_29 = arith.constant dense<0.000000e+00> : vector<8xf32>
    %37 = vector.multi_reduction <add>, %36, %cst_29 [1] : vector<8x8xf32> to vector<8xf32>
    %38 = vector.shape_cast %37 : vector<8xf32> to vector<8x1xf32>
    %39 = tpu.reciprocal %38 {approx = true} : vector<8x1xf32> -> vector<8x1xf32>
    %40 = vector.broadcast %39 : vector<8x1xf32> to vector<8x8xf32>
    %41 = arith.mulf %36, %40 : vector<8x8xf32>
    %cst_30 = arith.constant dense<0.000000e+00> : vector<8x8xf32>
    %42 = tpu.matmul %41, %28, %cst_30 {dimension_numbers = #tpu.dot_dimension_numbers<[1], [0], [0], [1], [0, 0, 1, 1], [], []>} : vector<8x8xf32>, vector<8x8xf32>, vector<8x8xf32> -> vector<8x8xf32>
    %43 = vector.extract_strided_slice %10 {offsets = [0, 8], sizes = [8, 8], strides = [1, 1]} : vector<8x32xf32> to vector<8x8xf32>
    %44 = vector.extract_strided_slice %15 {offsets = [0, 8], sizes = [8, 8], strides = [1, 1]} : vector<8x32xf32> to vector<8x8xf32>
    %45 = vector.extract_strided_slice %20 {offsets = [0, 8], sizes = [8, 8], strides = [1, 1]} : vector<8x32xf32> to vector<8x8xf32>
    %cst_31 = arith.constant dense<0.000000e+00> : vector<8x8xf32>
    %46 = tpu.matmul %43, %44, %cst_31 {dimension_numbers = #tpu.dot_dimension_numbers<[1], [1], [0], [0], [0, 0, 1, 0], [], []>} : vector<8x8xf32>, vector<8x8xf32>, vector<8x8xf32> -> vector<8x8xf32>
    %cst_32 = arith.constant -1.000000e+09 : f32
    %47 = vector.broadcast %cst_32 : f32 to vector<8x8xf32>
    %48 = arith.select %25, %46, %47 : vector<8x8xi1>, vector<8x8xf32>
    %cst_33 = arith.constant dense<0xFF800000> : vector<8xf32>
    %49 = vector.multi_reduction <maximumf>, %48, %cst_33 [1] : vector<8x8xf32> to vector<8xf32>
    %50 = vector.shape_cast %49 : vector<8xf32> to vector<8x1xf32>
    %51 = vector.broadcast %50 : vector<8x1xf32> to vector<8x8xf32>
    %52 = arith.subf %48, %51 : vector<8x8xf32>
    %53 = math.exp %52 : vector<8x8xf32>
    %cst_34 = arith.constant dense<0.000000e+00> : vector<8xf32>
    %54 = vector.multi_reduction <add>, %53, %cst_34 [1] : vector<8x8xf32> to vector<8xf32>
    %55 = vector.shape_cast %54 : vector<8xf32> to vector<8x1xf32>
    %56 = tpu.reciprocal %55 {approx = true} : vector<8x1xf32> -> vector<8x1xf32>
    %57 = vector.broadcast %56 : vector<8x1xf32> to vector<8x8xf32>
    %58 = arith.mulf %53, %57 : vector<8x8xf32>
    %cst_35 = arith.constant dense<0.000000e+00> : vector<8x8xf32>
    %59 = tpu.matmul %58, %45, %cst_35 {dimension_numbers = #tpu.dot_dimension_numbers<[1], [0], [0], [1], [0, 0, 1, 1], [], []>} : vector<8x8xf32>, vector<8x8xf32>, vector<8x8xf32> -> vector<8x8xf32>
    %60 = vector.extract_strided_slice %10 {offsets = [0, 16], sizes = [8, 8], strides = [1, 1]} : vector<8x32xf32> to vector<8x8xf32>
    %61 = vector.extract_strided_slice %15 {offsets = [0, 16], sizes = [8, 8], strides = [1, 1]} : vector<8x32xf32> to vector<8x8xf32>
    %62 = vector.extract_strided_slice %20 {offsets = [0, 16], sizes = [8, 8], strides = [1, 1]} : vector<8x32xf32> to vector<8x8xf32>
    %cst_36 = arith.constant dense<0.000000e+00> : vector<8x8xf32>
    %63 = tpu.matmul %60, %61, %cst_36 {dimension_numbers = #tpu.dot_dimension_numbers<[1], [1], [0], [0], [0, 0, 1, 0], [], []>} : vector<8x8xf32>, vector<8x8xf32>, vector<8x8xf32> -> vector<8x8xf32>
    %cst_37 = arith.constant -1.000000e+09 : f32
    %64 = vector.broadcast %cst_37 : f32 to vector<8x8xf32>
    %65 = arith.select %25, %63, %64 : vector<8x8xi1>, vector<8x8xf32>
    %cst_38 = arith.constant dense<0xFF800000> : vector<8xf32>
    %66 = vector.multi_reduction <maximumf>, %65, %cst_38 [1] : vector<8x8xf32> to vector<8xf32>
    %67 = vector.shape_cast %66 : vector<8xf32> to vector<8x1xf32>
    %68 = vector.broadcast %67 : vector<8x1xf32> to vector<8x8xf32>
    %69 = arith.subf %65, %68 : vector<8x8xf32>
    %70 = math.exp %69 : vector<8x8xf32>
    %cst_39 = arith.constant dense<0.000000e+00> : vector<8xf32>
    %71 = vector.multi_reduction <add>, %70, %cst_39 [1] : vector<8x8xf32> to vector<8xf32>
    %72 = vector.shape_cast %71 : vector<8xf32> to vector<8x1xf32>
    %73 = tpu.reciprocal %72 {approx = true} : vector<8x1xf32> -> vector<8x1xf32>
    %74 = vector.broadcast %73 : vector<8x1xf32> to vector<8x8xf32>
    %75 = arith.mulf %70, %74 : vector<8x8xf32>
    %cst_40 = arith.constant dense<0.000000e+00> : vector<8x8xf32>
    %76 = tpu.matmul %75, %62, %cst_40 {dimension_numbers = #tpu.dot_dimension_numbers<[1], [0], [0], [1], [0, 0, 1, 1], [], []>} : vector<8x8xf32>, vector<8x8xf32>, vector<8x8xf32> -> vector<8x8xf32>
    %77 = vector.extract_strided_slice %10 {offsets = [0, 24], sizes = [8, 8], strides = [1, 1]} : vector<8x32xf32> to vector<8x8xf32>
    %78 = vector.extract_strided_slice %15 {offsets = [0, 24], sizes = [8, 8], strides = [1, 1]} : vector<8x32xf32> to vector<8x8xf32>
    %79 = vector.extract_strided_slice %20 {offsets = [0, 24], sizes = [8, 8], strides = [1, 1]} : vector<8x32xf32> to vector<8x8xf32>
    %cst_41 = arith.constant dense<0.000000e+00> : vector<8x8xf32>
    %80 = tpu.matmul %77, %78, %cst_41 {dimension_numbers = #tpu.dot_dimension_numbers<[1], [1], [0], [0], [0, 0, 1, 0], [], []>} : vector<8x8xf32>, vector<8x8xf32>, vector<8x8xf32> -> vector<8x8xf32>
    %cst_42 = arith.constant -1.000000e+09 : f32
    %81 = vector.broadcast %cst_42 : f32 to vector<8x8xf32>
    %82 = arith.select %25, %80, %81 : vector<8x8xi1>, vector<8x8xf32>
    %cst_43 = arith.constant dense<0xFF800000> : vector<8xf32>
    %83 = vector.multi_reduction <maximumf>, %82, %cst_43 [1] : vector<8x8xf32> to vector<8xf32>
    %84 = vector.shape_cast %83 : vector<8xf32> to vector<8x1xf32>
    %85 = vector.broadcast %84 : vector<8x1xf32> to vector<8x8xf32>
    %86 = arith.subf %82, %85 : vector<8x8xf32>
    %87 = math.exp %86 : vector<8x8xf32>
    %cst_44 = arith.constant dense<0.000000e+00> : vector<8xf32>
    %88 = vector.multi_reduction <add>, %87, %cst_44 [1] : vector<8x8xf32> to vector<8xf32>
    %89 = vector.shape_cast %88 : vector<8xf32> to vector<8x1xf32>
    %90 = tpu.reciprocal %89 {approx = true} : vector<8x1xf32> -> vector<8x1xf32>
    %91 = vector.broadcast %90 : vector<8x1xf32> to vector<8x8xf32>
    %92 = arith.mulf %87, %91 : vector<8x8xf32>
    %cst_45 = arith.constant dense<0.000000e+00> : vector<8x8xf32>
    %93 = tpu.matmul %92, %79, %cst_45 {dimension_numbers = #tpu.dot_dimension_numbers<[1], [0], [0], [1], [0, 0, 1, 1], [], []>} : vector<8x8xf32>, vector<8x8xf32>, vector<8x8xf32> -> vector<8x8xf32>
    %94 = tpu.concatenate %42, %59, %76, %93 in 1 : vector<8x8xf32>, vector<8x8xf32>, vector<8x8xf32>, vector<8x8xf32> -> vector<8x32xf32>
    %c0_46 = arith.constant 0 : index
    %c0_47 = arith.constant 0 : index
    %95 = vector.load %arg8[%c0_46, %c0_47] : memref<32x32xf32, #tpu.memory_space<vmem>>, vector<32x32xf32>
    %cst_48 = arith.constant dense<0.000000e+00> : vector<8x32xf32>
    %96 = tpu.matmul %94, %95, %cst_48 {dimension_numbers = #tpu.dot_dimension_numbers<[1], [0], [0], [1], [0, 0, 1, 1], [], []>} : vector<8x32xf32>, vector<32x32xf32>, vector<8x32xf32> -> vector<8x32xf32>
    %c0_49 = arith.constant 0 : index
    %c0_50 = arith.constant 0 : index
    %97 = vector.load %arg12[%c0_49, %c0_50] : memref<1x32xf32, #tpu.memory_space<vmem>>, vector<1x32xf32>
    %98 = vector.broadcast %97 : vector<1x32xf32> to vector<8x32xf32>
    %99 = arith.addf %96, %98 : vector<8x32xf32>
    %c0_51 = arith.constant 0 : index
    %c0_52 = arith.constant 0 : index
    %c0_53 = arith.constant 0 : index
    %100 = vector.load %arg13[%c0_51, %c0_52, %c0_53] : memref<1x8x32xf32, #tpu.memory_space<vmem>>, vector<1x8x32xf32>
    %101 = vector.shape_cast %100 : vector<1x8x32xf32> to vector<8x32xf32>
    %102 = vector.shape_cast %99 : vector<8x32xf32> to vector<1x8x32xf32>
    tpu.vector_store %arg13[%c0_51, %c0_52, %c0_53], %102 {strides = array<i32>} : memref<1x8x32xf32, #tpu.memory_space<vmem>>, vector<1x8x32xf32>,
    return
  }
  func.func @transform_0(%arg0: i32) -> (i32, i32, i32) {
    %c0_i32 = arith.constant 0 : i32
    %c0_i32_0 = arith.constant 0 : i32
    %c0_i32_1 = arith.constant 0 : i32
    return %arg0, %c0_i32, %c0_i32_0 : i32, i32, i32
  }
  func.func @transform_1(%arg0: i32) -> (i32, i32, i32) {
    %c0_i32 = arith.constant 0 : i32
    %c0_i32_0 = arith.constant 0 : i32
    %c0_i32_1 = arith.constant 0 : i32
    return %arg0, %c0_i32, %c0_i32_0 : i32, i32, i32
  }
  func.func @transform_2(%arg0: i32) -> (i32, i32, i32) {
    %c0_i32 = arith.constant 0 : i32
    %c0_i32_0 = arith.constant 0 : i32
    %c0_i32_1 = arith.constant 0 : i32
    return %arg0, %c0_i32, %c0_i32_0 : i32, i32, i32
  }
  func.func @transform_3(%arg0: i32) -> (i32, i32, i32) {
    %c0_i32 = arith.constant 0 : i32
    %c0_i32_0 = arith.constant 0 : i32
    %c0_i32_1 = arith.constant 0 : i32
    return %arg0, %c0_i32, %c0_i32_0 : i32, i32, i32
  }
  func.func @transform_4(%arg0: i32) -> (i32, i32) {
    %c0_i32 = arith.constant 0 : i32
    %c0_i32_0 = arith.constant 0 : i32
    %c0_i32_1 = arith.constant 0 : i32
    return %c0_i32, %c0_i32_0 : i32, i32
  }
  func.func @transform_5(%arg0: i32) -> (i32, i32) {
    %c0_i32 = arith.constant 0 : i32
    %c0_i32_0 = arith.constant 0 : i32
    %c0_i32_1 = arith.constant 0 : i32
    return %c0_i32, %c0_i32_0 : i32, i32
  }
  func.func @transform_6(%arg0: i32) -> (i32, i32) {
    %c0_i32 = arith.constant 0 : i32
    %c0_i32_0 = arith.constant 0 : i32
    %c0_i32_1 = arith.constant 0 : i32
    return %c0_i32, %c0_i32_0 : i32, i32
  }
  func.func @transform_7(%arg0: i32) -> (i32, i32) {
    %c0_i32 = arith.constant 0 : i32
    %c0_i32_0 = arith.constant 0 : i32
    %c0_i32_1 = arith.constant 0 : i32
    return %c0_i32, %c0_i32_0 : i32, i32
  }
  func.func @transform_8(%arg0: i32) -> (i32, i32) {
    %c0_i32 = arith.constant 0 : i32
    %c0_i32_0 = arith.constant 0 : i32
    %c0_i32_1 = arith.constant 0 : i32
    return %c0_i32, %c0_i32_0 : i32, i32
  }
  func.func @transform_9(%arg0: i32) -> (i32, i32) {
    %c0_i32 = arith.constant 0 : i32
    %c0_i32_0 = arith.constant 0 : i32
    %c0_i32_1 = arith.constant 0 : i32
    return %c0_i32, %c0_i32_0 : i32, i32
  }
  func.func @transform_10(%arg0: i32) -> (i32, i32) {
    %c0_i32 = arith.constant 0 : i32
    %c0_i32_0 = arith.constant 0 : i32
    %c0_i32_1 = arith.constant 0 : i32
    return %c0_i32, %c0_i32_0 : i32, i32
  }
  func.func @transform_11(%arg0: i32) -> (i32, i32) {
    %c0_i32 = arith.constant 0 : i32
    %c0_i32_0 = arith.constant 0 : i32
    %c0_i32_1 = arith.constant 0 : i32
    return %c0_i32, %c0_i32_0 : i32, i32
  }
  func.func @transform_12(%arg0: i32) -> (i32, i32, i32) {
    %c0_i32 = arith.constant 0 : i32
    %c0_i32_0 = arith.constant 0 : i32
    %c0_i32_1 = arith.constant 0 : i32
    return %arg0, %c0_i32, %c0_i32_0 : i32, i32, i32
  }
}

</mosaic_0001>

<bundles_post_ra>
// kernel: tpu_custom_call.1
= control target key start
LH: loop header
LB: loop body
LE: loop exit
PB: predicated region body
PF: predicated region fallthrough
CT: control target
= control target key end

     0   :  { %s2925_s0 = inlined_call_operand.hbm [shape: f32[2,8,32], index: 0, kind: input, shape index: {}]   ;;  %s2926_s1 = inlined_call_operand.hbm [shape: f32[2,8,32], index: 1, kind: input, shape index: {}]   ;;  %s2927_s2 = inlined_call_operand.hbm [shape: f32[2,8,32], index: 2, kind: input, shape index: {}]   ;;  %s2928_s3 = inlined_call_operand.vmem [shape: s8[2,8,8], index: 3, kind: input, shape index: {}]   ;;  %s2929_s4 = inlined_call_operand.hbm [shape: f32[32,32], index: 4, kind: input, shape index: {}]   ;;  %s2930_s5 = inlined_call_operand.hbm [shape: f32[32,32], index: 5, kind: input, shape index: {}]   ;;  %s2931_s6 = inlined_call_operand.hbm [shape: f32[32,32], index: 6, kind: input, shape index: {}]   ;;  %s2932_s7 = inlined_call_operand.hbm [shape: f32[32,32], index: 7, kind: input, shape index: {}]   ;;  %s2933_s8 = inlined_call_operand.vmem [shape: f32[1,32], index: 8, kind: input, shape index: {}]   ;;  %s2934_s9 = inlined_call_operand.vmem [shape: f32[1,32], index: 9, kind: input, shape index: {}]   ;;  %s2935_s10 = inlined_call_operand.vmem [shape: f32[1,32], index: 10, kind: input, shape index: {}]   ;;  %s2936_s11 = inlined_call_operand.vmem [shape: f32[1,32], index: 11, kind: input, shape index: {}]   ;;  %s2937_s12 = inlined_call_operand.hbm [shape: f32[2,8,32], index: 12, kind: output, shape index: {}]  }
   0x1   :  { %2963 = sst [smem:[#allocation26_spill]] %s2926_s1 }
   0x2   :  { %2964 = sst [smem:[#allocation27_spill]] %s2928_s3 }
   0x3   :  { %2965 = sst [smem:[#allocation28_spill]] %s2929_s4 }
   0x4   :  { %2966 = sst [smem:[#allocation29_spill]] %s2931_s6 }
   0x5   :  { %2967 = sst [smem:[#allocation30_spill]] %s2933_s8 }
   0x6   :  { %2968 = sst [smem:[#allocation31_spill]] %s2935_s10 }
   0x7   :  { %2969 = sst [smem:[#allocation32_spill]] %s2936_s11 }
   0x8   :  { %2970 = sst [smem:[#allocation33_spill]] %s2937_s12 }
   0x9   :  { %17 = vsyncpa [#allocation3], 0 }
   0xa   :  { %19 = vsyncpa [#allocation3 + $0x1], 0 }
   0xb   :  { %20 = vsyncpa [#allocation6], 0 }
   0xc   :  { %22 = vsyncpa [#allocation6 + $0x1], 0 }
   0xd   :  { %23 = vsyncpa [#allocation9], 0 }
   0xe   :  { %24 = vsyncpa [#allocation12], 0 }
   0xf   :  { %25 = vsyncpa [#allocation4], 0 }
  0x10   :  { %27 = vsyncpa [#allocation4 + $0x1], 0  ;;  %s2456_s21 = smov 0   ;;  %s2458_s22 = smov 0  }
  0x11   :  { %s2460_s23 = smov 0   ;;  %s2462_s24 = smov 0  }
  0x12 LB: > { %2971 = sst [smem:[#allocation20_spill]] %s2358_s21  ;;  %s2372_s25 = smov [#allocation8]   ;;  %s2370_s24 = sphi %s2462_s24, %s3014_s24   ;;  %s2366_s23 = sphi %s2460_s23, %s3018_s23   ;;  %s2362_s22 = sphi %s2458_s22, %s3017_s22   ;;  %s2358_s21 = sphi %s2456_s21, %s3016_s21  }
  0x13   : > { %2972 = sst [smem:[#allocation21_spill]] %s2370_s24  ;;  %s348_s26 = sshll.u32 %s2372_s25, 4  ;;  %s2482_s26 = int_to_ptr.vmem [resolvable:$true] %s348_s26 }
  0x14   : > { %s2477_s27 = sadd.s32 4294967295, %s2370_s24   ;;  %p1776_p0 = scmp.ge.s32.totalorder %s2370_s24, 1 }
  0x15   : > { %p2950_p1 = scmp.eq.s32.totalorder %s2477_s27, 0  ;;  %p336_p2 = scmp.lt.s32.totalorder %s2370_s24, 3 }
  0x16   : > { %s2373_s29 = smov [#allocation11]   ;;  %s2975_s4 = sld [smem:[#allocation28_spill]] }
  0x17   : > { %p2484_p3 = pnand %p1776_p0, %p336_p2  ;;  %s374_s30 = sshll.u32 %s2373_s29, 4  ;;  %s2497_s30 = int_to_ptr.vmem [resolvable:$true] %s374_s30 }
  0x19   : > { %s2973_s28 = scalar_select %p2484_p3, 1, 0 }
  0x1a   : > { %p1990_p5 = pneg %p2484_p3 }
  0x1c   : > { %p2493_p6 = pnand %p1990_p5, %p2950_p1  ;;  %s2090_s16 = scalar_lea.hbm %s2975_s4, 512 }
  0x1d   : > { %p2091_p7 = scmp.ne.s32.totalorder %s2975_s4, %s2090_s16  ;;  %p2097_p11 = scmp.lt.u32.totalorder %s2090_s16, %s2975_s4 }
  0x1e   : > { %s2974_s13 = scalar_select %p2493_p6, 1, 0 }
  0x1f   : > { %p2507_p8 = pneg %p2493_p6 }
  0x21   : > { %s2976_s19 = scalar_select %p2507_p8, 1, 0 }
  0x22   : > { %p2093_p9 = pnand %p2507_p8, %p2091_p7 }
  0x24   : > { %p2094_p10 = pneg %p2093_p9 }
  0x26   : > { %p2099_p12 = pnand %p2097_p11, %p2094_p10 }
  0x28   : > { %2102 = shalt.err (!%p2099_p12)
}
  0x29   : > { %s2103_s29 = scalar_lea.vmem %s2482_s26, 512  ;;  %p2111_p5 = scmp.lt.s32.totalorder %s2482_s26, %s2482_s26 }
  0x2a   : > { %p2104_p13 = scmp.ne.s32.totalorder %s2482_s26, %s2103_s29  ;;  %p2112_p4 = scmp.lt.s32.totalorder %s2103_s29, %s2103_s29 }
  0x2c   : > { %p2106_p0 = pnand %p2104_p13, %p2507_p8  ;;  %p2113_p7 = por %p2112_p4, %p2111_p5 }
  0x2e   : > { %p2107_p2 = pneg %p2106_p0 }
  0x30   : > { %p2114_p9 = pnand %p2113_p7, %p2107_p2 }
  0x32   : > { %2117 = shalt.err (!%p2114_p9)
}
  0x33   : > { %s2940_s14 = smov 128   ;;  %s2942_s15 = smov 8  }
  0x34   : > { %1993 = dma.hbm_to_vmem [thread:$0]  (!%p2493_p6), %s2975_s4, 512, %s2482_s26, [#allocation9], %s2940_s14, %s2940_s14, %s2942_s15  }
  0x35   : > { %s2977_s6 = sld [smem:[#allocation29_spill]] }
  0x3b   : > { %s2118_s25 = scalar_lea.hbm %s2977_s6, 512 }
  0x3c   : > { %p2119_p4 = scmp.ne.s32.totalorder %s2977_s6, %s2118_s25  ;;  %p2125_p12 = scmp.lt.u32.totalorder %s2118_s25, %s2977_s6 }
  0x3e   : > { %p2121_p10 = pnand %p2119_p4, %p2507_p8 }
  0x40   : > { %p2122_p11 = pneg %p2121_p10 }
  0x42   : > { %p2127_p13 = pnand %p2125_p12, %p2122_p11 }
  0x44   : > { %2130 = shalt.err (!%p2127_p13)
}
  0x45   : > { %s2131_s26 = scalar_lea.vmem %s2497_s30, 512  ;;  %p2139_p7 = scmp.lt.s32.totalorder %s2497_s30, %s2497_s30 }
  0x46   : > { %p2132_p0 = scmp.ne.s32.totalorder %s2497_s30, %s2131_s26  ;;  %p2140_p9 = scmp.lt.s32.totalorder %s2131_s26, %s2131_s26 }
  0x48   : > { %p2134_p2 = pnand %p2132_p0, %p2507_p8  ;;  %p2141_p4 = por %p2140_p9, %p2139_p7 }
  0x4a   : > { %p2135_p5 = pneg %p2134_p2 }
  0x4c   : > { %p2142_p10 = pnand %p2141_p4, %p2135_p5 }
  0x4e   : > { %2145 = shalt.err (!%p2142_p10)
}
  0x4f   : > { %1999 = dma.hbm_to_vmem [thread:$0]  (!%p2493_p6), %s2977_s6, 512, %s2497_s30, [#allocation12], %s2940_s14, %s2940_s14, %s2942_s15  }
  0x50   : > { %s1775_s12 = sadd.s32 4294967294, %s2370_s24   ;;  %s2559_s16 = sadd.s32 1, %s2370_s24  }
  0x51   : > { %2978 = sst [smem:[#allocation22_spill]] %s2559_s16  ;;  %s37_s17 = ssub.s32 %s2370_s24, %s2559_s16 }
  0x52   : > { %s40_s18 = sadd.s32 1, %s2366_s23  ;;  %p38_p11 = scmp.eq.s32.totalorder %s37_s17, 0 }
  0x53   : > { %p47_p12 = scmp.ne.s32.totalorder %s2366_s23, %s2362_s22  ;;  %p48_p13 = scmp.eq.s32.totalorder %s2370_s24, 0 }
  0x54   : > { %p53_p0 = scmp.ne.s32.totalorder %s2362_s22, %s2358_s21  ;;  %p323_p7 = scmp.eq.s32.totalorder %s2477_s27, 1 }
  0x55   : > { %s2570_s20 = scalar_select %p38_p11, %s2366_s23, %s40_s18  }
  0x56   : > { %p49_p2 = por %p48_p13, %p47_p12  ;;  %p2574_p5 = por %p2950_p1, %p53_p0 }
  0x57   : > { %2979 = sst [smem:[#allocation23_spill]] %s2570_s20  ;;  %p329_p9 = scmp.eq.s32.totalorder %s1775_s12, 1 }
  0x58   : > { %s2980_s25 = scalar_select %p2574_p5, 1, 0 }
  0x59   : > { %p2021_p4 = scmp.lt.s32.totalorder %s2370_s24, 2  ;;  %s2944_s30 = sand.u32 1, %s2366_s23  }
  0x5a   : > { %p2581_p10 = por %p323_p7, %p47_p12  ;;  %p2585_p3 = por %p329_p9, %p53_p0 }
  0x5b   : > { %s2591_s10 = sshll.u32 %s2944_s30, 3  ;;  %s2594_s11 = sshll.u32 %s2370_s24, 7 }
  0x5c   : > { %s2981_s29 = scalar_select %p2581_p10, 1, 0 }
  0x5d   : > { %s2983_s26 = scalar_select %p2585_p3, 1, 0 }
  0x5e   : > { %2982 = sst [smem:[#allocation24_spill]] %s2981_s29  ;;  %p2596_p11 = pnand %p2021_p4, %p49_p2 }
  0x5f   : > { %2984 = sst [smem:[#allocation25_spill]] %s2983_s26  ;;  %s431_s12 = sand.u32 1, %s2370_s24  }
  0x60   : > { %s2985_s17 = scalar_select %p2596_p11, 1, 0 }
  0x61   : > { %s2986_s1 = sld [smem:[#allocation26_spill]]  ;;  %s435_s30 = scalar_lea.vmem [#allocation5], %s2591_s10 }
  0x62   : > { %s442_s4 = sshll.u32 %s435_s30, 4  ;;  %s2376_s6 = smov [#allocation10]   ;;  %s2608_s4 = int_to_ptr.vmem [resolvable:$true] %s442_s4 }
  0x63   : > { %s2610_s20 = sshll.u32 %s2376_s6, 4  ;;  %s2612_s16 = scalar_lea.sflag [#allocation6], %s431_s12  ;;  %s362_s20 = int_to_ptr.vmem [resolvable:$true] %s2610_s20 }
  0x64   : > { %p2618_p13 = pneg %p2596_p11 }
  0x66   : > { %s2987_s14 = scalar_select %p2618_p13, 1, 0 }
  0x67   : > { %s2605_s15 = scalar_lea.hbm %s2986_s1, %s2594_s11  ;;  %s2151_s24 = scalar_lea.hbm %s2986_s1, 256 }
  0x68   : > { %s2146_s26 = scalar_lea.hbm %s2605_s15, 128  ;;  %p2152_p7 = scmp.lt.u32.totalorder %s2605_s15, %s2986_s1 }
  0x69   : > { %p2147_p12 = scmp.ne.s32.totalorder %s2605_s15, %s2146_s26  ;;  %p2153_p9 = scmp.lt.u32.totalorder %s2151_s24, %s2146_s26 }
  0x6a   : > { %p2155_p1 = scmp.lt.u32.totalorder %s2146_s26, %s2605_s15 }
  0x6b   : > { %p2149_p0 = pnand %p2618_p13, %p2147_p12  ;;  %p2154_p4 = por %p2153_p9, %p2152_p7 }
  0x6d   : > { %p2150_p2 = pneg %p2149_p0  ;;  %p2156_p3 = por %p2155_p1, %p2154_p4 }
  0x6f   : > { %p2157_p10 = pnand %p2156_p3, %p2150_p2 }
  0x71   : > { %2160 = shalt.err (!%p2157_p10)
}
  0x72   : > { %s2161_s12 = scalar_lea.vmem %s2608_s4, 128  ;;  %s2377_s18 = smov [#allocation5]  }
  0x73   : > { %p2162_p12 = scmp.ne.s32.totalorder %s2608_s4, %s2161_s12  ;;  %s2166_s30 = sshll.u32 %s2377_s18, 4  ;;  %s2167_s30 = int_to_ptr.vmem [resolvable:$false] %s2166_s30 }
  0x74   : > { %s2168_s21 = scalar_lea.vmem %s2167_s30, 256  ;;  %p2169_p6 = scmp.lt.s32.totalorder %s2608_s4, %s2167_s30 }
  0x75   : > { %p2164_p0 = pnand %p2162_p12, %p2618_p13  ;;  %p2170_p8 = scmp.lt.s32.totalorder %s2168_s21, %s2161_s12 }
  0x77   : > { %p2165_p5 = pneg %p2164_p0  ;;  %p2171_p7 = por %p2170_p8, %p2169_p6 }
  0x79   : > { %p2172_p9 = pnand %p2171_p7, %p2165_p5 }
  0x7b   : > { %2175 = shalt.err (!%p2172_p9)
}
  0x7c   : > { %2009 = dma.hbm_to_vmem [thread:$0]  (!%p2596_p11), %s2605_s15, 128, %s2608_s4, %s2612_s16  }
  0x7d   : > { %s2176_s6 = scalar_lea.hbm %s2930_s5, 512  ;;  %p2988_p3 = scmp.ne.s32.totalorder %s2976_s19, 0 }
  0x7e   : > { %p2177_p1 = scmp.ne.s32.totalorder %s2930_s5, %s2176_s6  ;;  %p2183_p5 = scmp.lt.u32.totalorder %s2176_s6, %s2930_s5 }
  0x80   : > { %p2179_p6 = pnand %p2177_p1, %p2988_p3 }
  0x82   : > { %p2180_p8 = pneg %p2179_p6 }
  0x84   : > { %p2185_p10 = pnand %p2183_p5, %p2180_p8 }
  0x86   : > { %2188 = shalt.err (!%p2185_p10)
}
  0x87   : > { %s2189_s21 = scalar_lea.vmem %s362_s20, 512  ;;  %p2197_p0 = scmp.lt.s32.totalorder %s362_s20, %s362_s20 }
  0x88   : > { %p2190_p2 = scmp.ne.s32.totalorder %s362_s20, %s2189_s21  ;;  %p2198_p7 = scmp.lt.s32.totalorder %s2189_s21, %s2189_s21 }
  0x8a   : > { %p2192_p4 = pnand %p2190_p2, %p2988_p3  ;;  %p2199_p9 = por %p2198_p7, %p2197_p0 }
  0x8c   : > { %p2193_p12 = pneg %p2192_p4 }
  0x8e   : > { %p2200_p11 = pnand %p2199_p9, %p2193_p12 }
  0x90   : > { %2203 = shalt.err (!%p2200_p11)
}
  0x91   : > { %p2989_p1 = scmp.ne.s32.totalorder %s2974_s13, 0  ;;  %s2990_s1 = smov 8  }
  0x92   : > { %s2991_s4 = smov 128   ;;  %s2378_s26 = smov [#allocation13]  }
  0x93   : > { %1996 = dma.hbm_to_vmem [thread:$0]  (!%p2989_p1), %s2930_s5, 512, %s362_s20, [#allocation9], %s2991_s4, %s2991_s4, %s2990_s1  }
  0x94   : > { %s387_s6 = sshll.u32 %s2378_s26, 4  ;;  %s2204_s30 = scalar_lea.hbm %s2932_s7, 512  ;;  %s388_s6 = int_to_ptr.vmem [resolvable:$true] %s387_s6 }
  0x95   : > { %p2205_p11 = scmp.ne.s32.totalorder %s2932_s7, %s2204_s30  ;;  %p2211_p5 = scmp.lt.u32.totalorder %s2204_s30, %s2932_s7 }
  0x97   : > { %p2207_p6 = pnand %p2205_p11, %p2988_p3 }
  0x99   : > { %p2208_p8 = pneg %p2207_p6 }
  0x9b   : > { %p2213_p10 = pnand %p2211_p5, %p2208_p8 }
  0x9d   : > { %2216 = shalt.err (!%p2213_p10)
}
  0x9e   : > { %s2217_s20 = scalar_lea.vmem %s388_s6, 512  ;;  %p2225_p0 = scmp.lt.s32.totalorder %s388_s6, %s388_s6 }
  0x9f   : > { %p2218_p2 = scmp.ne.s32.totalorder %s388_s6, %s2217_s20  ;;  %p2226_p7 = scmp.lt.s32.totalorder %s2217_s20, %s2217_s20 }
  0xa1   : > { %p2220_p4 = pnand %p2218_p2, %p2988_p3  ;;  %p2227_p9 = por %p2226_p7, %p2225_p0 }
  0xa3   : > { %p2221_p12 = pneg %p2220_p4 }
  0xa5   : > { %p2228_p13 = pnand %p2227_p9, %p2221_p12 }
  0xa7   : > { %2231 = shalt.err (!%p2228_p13)
}
  0xa8   : > { %2002 = dma.hbm_to_vmem [thread:$0]  (!%p2989_p1), %s2932_s7, 512, %s388_s6, [#allocation12], %s2991_s4, %s2991_s4, %s2990_s1  }
  0xa9   : > { %s2689_s15 = scalar_lea.hbm %s2925_s0, %s2594_s11  ;;  %s417_s13 = scalar_lea.vmem [#allocation2], %s2591_s10 }
  0xaa   : > { %s424_s24 = sshll.u32 %s417_s13, 4  ;;  %s2992_s26 = sand.u32 1, %s2366_s23   ;;  %s425_s24 = int_to_ptr.vmem [resolvable:$true] %s424_s24 }
  0xab   : > { %s414_s18 = scalar_lea.sflag [#allocation3], %s2992_s26  ;;  %s2232_s12 = scalar_lea.hbm %s2689_s15, 128 }
  0xac   : > { %p2233_p13 = scmp.ne.s32.totalorder %s2689_s15, %s2232_s12  ;;  %p2993_p3 = scmp.ne.s32.totalorder %s2987_s14, 0 }
  0xad   : > { %s2237_s6 = scalar_lea.hbm %s2925_s0, 256  ;;  %p2238_p1 = scmp.lt.u32.totalorder %s2689_s15, %s2925_s0 }
  0xae   : > { %p2235_p11 = pnand %p2233_p13, %p2993_p3  ;;  %p2239_p8 = scmp.lt.u32.totalorder %s2237_s6, %s2232_s12 }
  0xaf   : > { %p2241_p10 = scmp.lt.u32.totalorder %s2232_s12, %s2689_s15 }
  0xb0   : > { %p2236_p6 = pneg %p2235_p11  ;;  %p2240_p5 = por %p2239_p8, %p2238_p1 }
  0xb2   : > { %p2242_p2 = por %p2241_p10, %p2240_p5 }
  0xb4   : > { %p2243_p4 = pnand %p2242_p2, %p2236_p6 }
  0xb6   : > { %2246 = shalt.err (!%p2243_p4)
}
  0xb7   : > { %s2247_s20 = scalar_lea.vmem %s425_s24, 128  ;;  %s2379_s3 = smov [#allocation2]  }
  0xb8   : > { %p2248_p12 = scmp.ne.s32.totalorder %s425_s24, %s2247_s20  ;;  %s2252_s8 = sshll.u32 %s2379_s3, 4  ;;  %s2253_s8 = int_to_ptr.vmem [resolvable:$false] %s2252_s8 }
  0xb9   : > { %s2254_s19 = scalar_lea.vmem %s2253_s8, 256  ;;  %p2255_p9 = scmp.lt.s32.totalorder %s425_s24, %s2253_s8 }
  0xba   : > { %p2250_p0 = pnand %p2248_p12, %p2993_p3  ;;  %p2256_p13 = scmp.lt.s32.totalorder %s2254_s19, %s2247_s20 }
  0xbc   : > { %p2251_p7 = pneg %p2250_p0  ;;  %p2257_p11 = por %p2256_p13, %p2255_p9 }
  0xbe   : > { %p2258_p1 = pnand %p2257_p11, %p2251_p7 }
  0xc0   : > { %2261 = shalt.err (!%p2258_p1)
}
  0xc1   : > { %p2994_p8 = scmp.ne.s32.totalorder %s2985_s17, 0  ;;  %s2715_s26 = scalar_lea.hbm %s2927_s2, %s2594_s11 }
  0xc2   : > { %s453_s12 = scalar_lea.vmem [#allocation7], %s2591_s10  ;;  %s2262_s4 = scalar_lea.hbm %s2715_s26, 128 }
  0xc3   : > { %2006 = dma.hbm_to_vmem [thread:$0]  (!%p2994_p8), %s2689_s15, 128, %s425_s24, %s414_s18  }
  0xc4   : > { %s460_s1 = sshll.u32 %s453_s12, 4  ;;  %p2263_p6 = scmp.ne.s32.totalorder %s2715_s26, %s2262_s4  ;;  %s461_s1 = int_to_ptr.vmem [resolvable:$true] %s460_s1 }
  0xc5   : > { %s2267_s15 = scalar_lea.hbm %s2927_s2, 256  ;;  %p2268_p2 = scmp.lt.u32.totalorder %s2715_s26, %s2927_s2 }
  0xc6   : > { %p2265_p5 = pnand %p2263_p6, %p2993_p3  ;;  %p2269_p4 = scmp.lt.u32.totalorder %s2267_s15, %s2262_s4 }
  0xc7   : > { %p2271_p0 = scmp.lt.u32.totalorder %s2262_s4, %s2715_s26 }
  0xc8   : > { %p2266_p10 = pneg %p2265_p5  ;;  %p2270_p12 = por %p2269_p4, %p2268_p2 }
  0xca   : > { %p2272_p7 = por %p2271_p0, %p2270_p12 }
  0xcc   : > { %p2273_p9 = pnand %p2272_p7, %p2266_p10 }
  0xce   : > { %2276 = shalt.err (!%p2273_p9)
}
  0xcf   : > { %s2277_s10 = scalar_lea.vmem %s461_s1, 128  ;;  %s2380_s11 = smov [#allocation7]  }
  0xd0   : > { %p2278_p13 = scmp.ne.s32.totalorder %s461_s1, %s2277_s10  ;;  %s2282_s21 = sshll.u32 %s2380_s11, 4  ;;  %s2283_s21 = int_to_ptr.vmem [resolvable:$false] %s2282_s21 }
  0xd1   : > { %s2284_s20 = scalar_lea.vmem %s2283_s21, 256  ;;  %p2285_p6 = scmp.lt.s32.totalorder %s461_s1, %s2283_s21 }
  0xd2   : > { %p2280_p11 = pnand %p2278_p13, %p2993_p3  ;;  %p2286_p5 = scmp.lt.s32.totalorder %s2284_s20, %s2277_s10 }
  0xd4   : > { %p2281_p1 = pneg %p2280_p11  ;;  %p2287_p8 = por %p2286_p5, %p2285_p6 }
  0xd6   : > { %p2288_p2 = pnand %p2287_p8, %p2281_p1 }
  0xd8   : > { %2291 = shalt.err (!%p2288_p2)
}
  0xd9   : > { %p2995_p4 = scmp.ne.s32.totalorder %s2985_s17, 0  ;;  %p2996_p10 = scmp.ne.s32.totalorder %s2973_s28, 0 }
  0xda   : > { %s2739_s14 = sand.u32 (!%p2996_p10), 1, %s2362_s22   ;;  %p2997_p3 = scmp.ne.s32.totalorder (!%p2996_p10), %s2980_s25, 0 }
  0xdb   : > { %2012 = dma.hbm_to_vmem [thread:$0]  (!%p2995_p4), %s2715_s26, 128, %s461_s1, %s2612_s16  }
  0xdc   : > { %476 = sbr.rel (%p2996_p10) target bundleno = 2143 (0x85f), region = 68  ;;  %s2742_s3 = sshll.u32 (!%p2996_p10), %s2739_s14, 3 }
  0xdd   : > { %s479_s8 = scalar_lea.sflag (!%p2996_p10), [#allocation3], %s2739_s14  ;;  %s482_s19 = scalar_lea.vmem (!%p2996_p10), [#allocation2], %s2742_s3 }
  0xe3   : > { %2337 = dma.done.wait (%p2997_p3), %s479_s8, 128  }
  0xe4   : > { %2339 = vsyncadd (%p2997_p3), %s479_s8, 4294967168  ;;  %s487_s28 = sand.u32 1, %s2477_s27   ;;  %s491_s17 = scalar_lea.vmem [#allocation5], %s2742_s3 }
  0xe5   : > { %s488_s16 = scalar_lea.sflag [#allocation6], %s487_s28 }
  0xe6   : > { %2341 = dma.done.wait (%p2997_p3), %s488_s16, 256  }
  0xe7   : > { %2343 = vsyncadd (%p2997_p3), %s488_s16, 4294967040  ;;  %s500_s29 = scalar_lea.vmem [#allocation7], %s2742_s3  ;;  %p2998_p8 = scmp.eq.s32.totalorder %s2477_s27, 0 }
  0xe9   : > { %2345 = dma.done.wait (%p2998_p8), [#allocation9], 1024   ;;  %p2999_p12 = pmov %p2998_p8 }
  0xea   : > { %p3000_p0 = pmov %p2998_p8 }
  0xeb   : > { %2347 = vsyncadd (%p2999_p12), [#allocation9], 4294966272 }
  0xec   : > { %2349 = dma.done.wait (%p3000_p0), [#allocation12], 1024   ;;  %p3001_p7 = pmov %p3000_p0 }
  0xed   : > { %v2381_v0 = vmov 0.0|0.0   ;;  %vm2382_vm0 = vmmov 0   ;;  %v2383_v1 = vmov 0.0   ;;  %v663_v2 = vld [vmem:[#allocation10] sm:$0xff]  ;;  %v664_v3 = vld [vmem:[#allocation10 + $0x8] sm:$0xff]  ;;  %v665_v7 = vld [vmem:[#allocation10 + $0x10] sm:$0xff] }
  0xee   : > { %2351 = vsyncadd (%p3001_p7), [#allocation12], 4294966272  ;;  %1948 = vmatprep.subr.bf16.mxu1 %v2381_v0  ;;  %1942 = vmatprep.subr.bf16.mxu0 %v2381_v0  ;;  %v578_v4 = vld [vmem:[#allocation8] sm:$0xff]  ;;  %v1949_v5 = vpack.c.bf16 %v664_v3, %v663_v2  ;;  %v579_v6 = vld [vmem:[#allocation8 + $0x8] sm:$0xff]  ;;  %vm589_vm1 = vcmask 261120   ;;  %s3002_s1 = sld [smem:[#allocation30_spill]] }
  0xef   : > { %1877 = vmatprep.mubr.msk.f32.mxu1 %vm2382_vm0, %v2383_v1  ;;  %1866 = vmatprep.mubr.msk.f32.mxu0 %vm2382_vm0, %v2383_v1  ;;  %v666_v8 = vld [vmem:[#allocation10 + $0x18] sm:$0xff]  ;;  %v1943_v9 = vpack.c.bf16 %v579_v6, %v578_v4  ;;  %v580_v10 = vld [vmem:[#allocation8 + $0x10] sm:$0xff]  ;;  %v576_v14 = vld [vmem:[%s491_s17] sm:$0xff]  ;;  %vm835_vm2 = vcmask 64512   ;;  %s2384_s4 = smov 120   ;;  %s2385_s6 = smov 112  }
  0xf0   : > { %v581_v11 = vld [vmem:[#allocation8 + $0x18] sm:$0xff]  ;;  %1950 = vmatpush3.bf16.msra.mxu1 %v1949_v5  ;;  %v1952_v12 = vpack.c.bf16 %v666_v8, %v665_v7  ;;  %v1800_v16 = vld [vmem:[%s2934_s9] ss:$0 sm:$0xff]  ;;  %s2386_s30 = smov 104   ;;  %v747_v24 = vld [vmem:[#allocation11] sm:$0xff]  ;;  %p571_p9 = scmp.lt.s32.totalorder %s2477_s27, 1 }
  0xf1   : > { %1944 = vmatpush3.bf16.msra.mxu0 %v1943_v9  ;;  %1951 = vmatprep.subr.bf16.mxu1 %v2381_v0  ;;  %v1946_v13 = vpack.c.bf16 %v581_v11, %v580_v10  ;;  %v575_v15 = vld [vmem:[%s482_s19] sm:$0xff]  ;;  %v748_v25 = vld [vmem:[#allocation11 + $0x8] sm:$0xff]  ;;  %s3003_s11 = sld [smem:[#allocation27_spill]]  ;;  %s3004_s19 = sld [smem:[#allocation31_spill]]  ;;  %vm1509_vm4 = vcmask 130048   ;;  %vm1511_vm5 = vcmask 195584  }
  0xf2   : > { %1945 = vmatprep.subr.bf16.mxu0 %v2381_v0  ;;  %v749_v26 = vld [vmem:[#allocation11 + $0x10] sm:$0xff]  ;;  %v1955_v27 = vpack.c.bf16 %v748_v25, %v747_v24  ;;  %v750_v28 = vld [vmem:[#allocation11 + $0x18] sm:$0xff]  ;;  %s572_s15 = scalar_select %p571_p9, %s2477_s27, 1 }
  0xf3   : > { %v1958_v29 = vpack.c.bf16 %v750_v28, %v749_v26  ;;  %v577_v30 = vld [vmem:[%s500_s29] sm:$0xff]  ;;  %s2387_s28 = smov 8   ;;  %s2388_s16 = smov 16  }
  0xf4   : > { %1953 = vmatpush3.bf16.msra.mxu1 %v1952_v12  ;;  %v1798_v17 = vld [vmem:[%s3002_s1] ss:$0 sm:$0xff]  ;;  %s1797_s24 = sshll.u32 %s572_s15, 1  ;;  %s2389_s17 = smov 24  }
  0xf5   : > { %1947 = vmatpush3.bf16.msra.mxu0 %v1946_v13  ;;  %1891 = vmatprep.subr.mxu1 %v2383_v1  ;;  %s3005_s29 = sld [smem:[#allocation24_spill]]  ;;  %s3006_s26 = sld [smem:[#allocation32_spill]] }
  0xf6   : > { %1954 = vmatprep.subr.bf16.mxu0 %v2381_v0  ;;  %s1819_s12 = sshll.u32 %s2477_s27, 7  ;;  %s570_s1 = scalar_lea.vmem [#allocation14], %s2742_s3 }
  0xf7   : > { %1878 = vmatmul.mubr.msk.f32.vlgmr.msra.gmra.mrb[0].mxu1 %vm589_vm1, %v576_v14  ;;  %s574_s21 = scalar_lea.vmem %s3003_s11, %s1797_s24  ;;  %v1802_v43 = vld [vmem:[%s3004_s19] ss:$0 sm:$0xff]  ;;  %s3007_s15 = sld [smem:[#allocation33_spill]] }
  0xf8   : > { %1867 = vmatmul.mubr.msk.f32.vlgmr.msra.gmra.mrb[0].mxu0 %vm589_vm1, %v575_v15  ;;  %1893 = vmatprep.mubr.msk.f32.mxu1 %vm2382_vm0, %v2383_v1  ;;  %v831_v31 = vld [vmem:[%s574_s21] sm:$0x3]  ;;  %s1599_s18 = scalar_lea.sflag [#allocation4], %s2739_s14  ;;  %s2390_s27 = smov [#allocation14]  }
  0xf9   : > { %1888 = vmatprep.mubr.msk.f32.mxu0 %vm2382_vm0, %v2383_v1  ;;  %1956 = vmatpush3.bf16.msra.mxu0 %v1955_v27  ;;  %v832_v32 = vunpack.c.0.s8 %v831_v31  ;;  %s2296_s3 = sshll.u32 %s2390_s27, 4  ;;  %s2297_s3 = int_to_ptr.vmem [resolvable:$false] %s2296_s3 }
  0xfa   : > { %1957 = vmatprep.subr.bf16.mxu0 %v2381_v0  ;;  %s2298_s11 = scalar_lea.vmem %s2297_s3, 256 }
  0xfb   : > { %v833_v33 = vcvt.s32.f32 %v832_v32  ;;  %p3008_p11 = scmp.ne.s32.totalorder %s3005_s29, 0 }
  0xfd   : > { %1959 = vmatpush3.bf16.msra.mxu0 %v1958_v29  ;;  %vm834_vm3 = vcmp.ne.f32.partialorder %v833_v33, 0.0  ;;  %s2880_s24 = scalar_lea.hbm %s3007_s15, %s1819_s12 }
  0xfe   : > { %1911 = vmatprep.subr.mxu0 %v2383_v1 }
 0x100   : > { %1889 = vmatmul.mubr.msk.f32.vlgmr.msra.gmra.mrb[2].mxu0 %vm589_vm1, %v577_v30 }
 0x101   : > { %1913 = vmatprep.mubr.msk.f32.mxu0 %vm2382_vm0, %v2383_v1 }
 0x1ca   : > { %v743_v18 = vpop.f32.mrb[0].mxu1 }
 0x1cb   : > { %v744_v19 = vadd.f32 %v1800_v16, %v743_v18  ;;  %v1879_v20 = vpop.f32.mrb[1].mxu1  ;;  %v659_v21 = vpop.f32.mrb[0].mxu0 }
 0x1cc   : > { %v660_v22 = vadd.f32 %v1798_v17, %v659_v21  ;;  %v1868_v23 = vpop.f32.mrb[1].mxu0 }
 0x1cd   : > { %999 = vrot.lane.b32.xlu1 %v744_v19, %s2384_s4  ;;  %1892 = vmatpush3.xpose.msk.msra.mxu1 %vm835_vm2, %v744_v19 }
 0x1ce   : > { %1896 = vmatprep.subr.mxu1 %v2383_v1 }
 0x1d0   : > { %1894 = vmatmul.mubr.msk.f32.vlgmr.msra.gmra.mrb[2].mxu1 %vm835_vm2, %v660_v22 }
 0x1d1   : > { %997 = vrot.lane.b32.xlu1 %v660_v22, %s2384_s4  ;;  %1898 = vmatprep.mubr.msk.f32.mxu1 %vm2382_vm0, %v2383_v1 }
 0x1d3   : > { %v827_v44 = vpop.f32.mrb[2].mxu0 }
 0x1d4   : > { %v2819_v45 = vadd.f32 %v1802_v43, %v827_v44  ;;  %v1890_v46 = vpop.f32.mrb[3].mxu0 }
 0x1d5   : > { %1164 = vrot.lane.b32.xlu1 %v660_v22, %s2385_s6 }
 0x1d6   : > { %1897 = vmatpush3.msra.mxu1 %v2819_v45 }
 0x1d7   : > { %1901 = vmatprep.subr.mxu1 %v2383_v1 }
 0x1d9   : > { %1332 = vrot.lane.b32.xlu1 %v744_v19, %s2386_s30 }
 0x1dd   : > { %1330 = vrot.lane.b32.xlu1 %v660_v22, %s2386_s30 }
 0x23f   : > { %v1000_v47 = vpop.permute.xlu1 %999 }
 0x243   : > { %v998_v48 = vpop.permute.xlu1 %997 }
 0x247   : > { %v1165_v49 = vpop.permute.xlu1 %1164 }
 0x24b   : > { %v1333_v52 = vpop.permute.xlu1 %1332 }
 0x24f   : > { %v1331_v54 = vpop.permute.xlu1 %1330 }
 0x2a3   : > { %v908_v34 = vpop.f32.mrb[2].mxu1 }
 0x2a4   : > { %v912_v35 = vsel %vm834_vm3, %v908_v34, -1e+09  ;;  %v1895_v36 = vpop.f32.mrb[3].mxu1 }
 0x2a5   : > { %v913_v37 = vsel %vm835_vm2, %v912_v35, -inf  ;;  %v1514_v36 = vld [vmem:[#allocation13 + $0x8] sm:$0xff] }
 0x2a6   : > { %914 = vmax.xlane.f32.xlu0 %v913_v37 }
 0x333   : > { %v915_v38 = vpop.xlane.xlu0 %914 }
 0x334   : > { %v916_v39 = vsub.f32 %v912_v35, %v915_v38  ;;  %v1513_v35 = vld [vmem:[#allocation13] sm:$0xff]  ;;  %v1515_v38 = vld [vmem:[#allocation13 + $0x10] sm:$0xff] }
 0x335   : > { %v1961_v37 = vpack.c.bf16 %v1514_v36, %v1513_v35 }
 0x336   : > { %v917_v40 = vmul.f32 1.442695, %v916_v39  ;;  %v1516_v39 = vld [vmem:[#allocation13 + $0x18] sm:$0xff] }
 0x338   : > { %2074 = vpow2.f32 %v917_v40  ;;  %v1964_v40 = vpack.c.bf16 %v1516_v39, %v1515_v38 }
 0x342   : > { %v2075_v41 = vpop.eup %2074 }
 0x343   : > { %v919_v42 = vsel %vm835_vm2, %v2075_v41, 0.0 }
 0x344   : > { %920 = vadd.xlane.f32.xlu0 %v919_v42 }
 0x35a   : > { %1166 = vrot.lane.b32.xlu0 %v744_v19, %s2385_s6 }
 0x3d1   : > { %v921_v50 = vpop.xlane.xlu0 %920 }
 0x3d2   : > { %2076 = vrcp.f32 %v921_v50 }
 0x3d5   : > { %v1167_v51 = vpop.permute.xlu0 %1166 }
 0x3d6   : > { %1912 = vmatpush3.xpose.msk.msra.mxu0 %vm835_vm2, %v1167_v51  ;;  %v1816_v51 = vld [vmem:[%s3006_s26] ss:$0 sm:$0xff] }
 0x3d7   : > { %1921 = vmatprep.subr.mxu0 %v2383_v1 }
 0x3d9   : > { %1914 = vmatmul.mubr.msk.f32.vlgmr.msra.gmra.mrb[4].mxu0 %vm835_vm2, %v1165_v49 }
 0x3da   : > { %1922 = vmatpush3.xpose.msk.msra.mxu0 %vm835_vm2, %v1333_v52  ;;  %1923 = vmatprep.mubr.msk.f32.mxu0 %vm2382_vm0, %v2383_v1 }
 0x3db   : > { %1960 = vmatprep.subr.bf16.mxu0 %v2381_v0 }
 0x3dc   : > { %v2077_v53 = vpop.eup %2076 }
 0x3dd   : > { %v923_v55 = vmul.f32 %v2077_v53, %v2075_v41  ;;  %1924 = vmatmul.mubr.msk.f32.vlgmr.msra.gmra.mrb[6].mxu0 %vm835_vm2, %v1331_v54 }
 0x3de   : > { %1939 = vmatprep.mubr.msk.f32.mxu0 %vm2382_vm0, %v2383_v1  ;;  %1962 = vmatpush3.bf16.msra.mxu0 %v1961_v37 }
 0x3df   : > { %1899 = vmatmul.mubr.msk.f32.vlgmr.msra.gmra.mrb[4].mxu1 %vm835_vm2, %v923_v55  ;;  %1963 = vmatprep.subr.bf16.mxu0 %v2381_v0 }
 0x3e0   : > { %1902 = vmatpush3.xpose.msk.msra.mxu1 %vm835_vm2, %v1000_v47  ;;  %1903 = vmatprep.mubr.msk.f32.mxu1 %vm2382_vm0, %v2383_v1 }
 0x3e1   : > { %1906 = vmatprep.subr.mxu1 %v2383_v1 }
 0x3e2   : > { %1965 = vmatpush3.bf16.msra.mxu0 %v1964_v40 }
 0x3e3   : > { %1904 = vmatmul.mubr.msk.f32.vlgmr.msra.gmra.mrb[6].mxu1 %vm835_vm2, %v998_v48 }
 0x3e4   : > { %1908 = vmatprep.mubr.msk.f32.mxu1 %vm2382_vm0, %v2383_v1 }
 0x4ac   : > { %v1238_v56 = vpop.f32.mrb[4].mxu0 }
 0x4ad   : > { %v1242_v57 = vsel %vm834_vm3, %v1238_v56, -1e+09  ;;  %v1915_v58 = vpop.f32.mrb[5].mxu0 }
 0x4ae   : > { %v1243_v59 = vsel %vm835_vm2, %v1242_v57, -inf }
 0x4af   : > { %1244 = vmax.xlane.f32.xlu0 %v1243_v59 }
 0x4b0   : > { %v1404_v60 = vpop.f32.mrb[6].mxu0 }
 0x4b1   : > { %v1925_v61 = vpop.f32.mrb[7].mxu0  ;;  %v1408_v6 = vsel %vm834_vm3, %v1404_v60, -1e+09 }
 0x4b2   : > { %v2844_v62 = vpop.f32.mrb[4].mxu1  ;;  %v1409_v7 = vsel %vm835_vm2, %v1408_v6, -inf }
 0x4b3   : > { %v1900_v63 = vpop.f32.mrb[5].mxu1 }
 0x4b6   : > { %v1071_v2 = vpop.f32.mrb[6].mxu1 }
 0x4b7   : > { %v1075_v3 = vsel %vm834_vm3, %v1071_v2, -1e+09  ;;  %v1905_v4 = vpop.f32.mrb[7].mxu1 }
 0x4b8   : > { %v1076_v5 = vsel %vm835_vm2, %v1075_v3, -inf }
 0x4b9   : > { %1077 = vmax.xlane.f32.xlu1 %v1076_v5 }
 0x4bd   : > { %1410 = vmax.xlane.f32.xlu1 %v1409_v7 }
 0x53c   : > { %v1245_v8 = vpop.xlane.xlu0 %1244 }
 0x53d   : > { %v1246_v9 = vsub.f32 %v1242_v57, %v1245_v8 }
 0x53f   : > { %v1247_v10 = vmul.f32 1.442695, %v1246_v9 }
 0x541   : > { %2078 = vpow2.f32 %v1247_v10 }
 0x546   : > { %v1078_v11 = vpop.xlane.xlu1 %1077 }
 0x547   : > { %v1079_v19 = vsub.f32 %v1075_v3, %v1078_v11 }
 0x549   : > { %v1080_v20 = vmul.f32 1.442695, %v1079_v19 }
 0x54a   : > { %v1411_v12 = vpop.xlane.xlu1 %1410 }
 0x54b   : > { %v2079_v13 = vpop.eup %2078  ;;  %v1412_v14 = vsub.f32 %v1408_v6, %v1411_v12 }
 0x54c   : > { %v1249_v15 = vsel %vm835_vm2, %v2079_v13, 0.0 }
 0x54d   : > { %v1413_v16 = vmul.f32 1.442695, %v1412_v14  ;;  %1250 = vadd.xlane.f32.xlu0 %v1249_v15 }
 0x54f   : > { %2080 = vpow2.f32 %v1413_v16 }
 0x550   : > { %2082 = vpow2.f32 %v1080_v20 }
 0x559   : > { %v2081_v17 = vpop.eup %2080 }
 0x55a   : > { %v1415_v18 = vsel %vm835_vm2, %v2081_v17, 0.0  ;;  %v2083_v21 = vpop.eup %2082 }
 0x55b   : > { %1416 = vadd.xlane.f32.xlu1 %v1415_v18  ;;  %v1082_v22 = vsel %vm835_vm2, %v2083_v21, 0.0 }
 0x563   : > { %1088 = vrot.lane.b32.xlu0 %v2819_v45, %s2384_s4  ;;  %s1612_s4 = sshll.u32 %s570_s1, 4  ;;  %s2882_s4 = int_to_ptr.vmem [resolvable:$true] %s1612_s4 }
 0x564   : > { %s2292_s10 = scalar_lea.vmem %s2882_s4, 128  ;;  %p2299_p5 = scmp.lt.s32.totalorder %s2882_s4, %s2297_s3 }
 0x565   : > { %p2293_p13 = scmp.ne.s32.totalorder %s2882_s4, %s2292_s10  ;;  %p2300_p2 = scmp.lt.s32.totalorder %s2298_s11, %s2292_s10 }
 0x567   : > { %p2294_p1 = pnand %p2293_p13, %p3008_p11  ;;  %p2301_p4 = por %p2300_p2, %p2299_p5 }
 0x569   : > { %p2295_p6 = pneg %p2294_p1 }
 0x56b   : > { %p2302_p10 = pnand %p2301_p4, %p2295_p6 }
 0x56c   : > { %1254 = vrot.lane.b32.xlu1 %v2819_v45, %s2385_s6 }
 0x590   : > { %1083 = vadd.xlane.f32.xlu1 %v1082_v22 }
 0x5a1   : > { %1420 = vrot.lane.b32.xlu1 %v2819_v45, %s2386_s30 }
 0x5da   : > { %v1251_v23 = vpop.xlane.xlu0 %1250 }
 0x5de   : > { %v1089_v24 = vpop.permute.xlu0 %1088 }
 0x5df   : > { %1907 = vmatpush3.msra.mxu1 %v1089_v24 }
 0x5e0   : > { %1916 = vmatprep.subr.mxu1 %v2383_v1 }
 0x5e8   : > { %v1417_v25 = vpop.xlane.xlu1 %1416 }
 0x5ec   : > { %v1255_v26 = vpop.permute.xlu1 %1254 }
 0x61d   : > { %v1084_v27 = vpop.xlane.xlu1 %1083 }
 0x61e   : > { %2084 = vrcp.f32 %v1084_v27 }
 0x61f   : > { %2086 = vrcp.f32 %v1251_v23 }
 0x620   : > { %2088 = vrcp.f32 %v1417_v25 }
 0x621   : > { %v1421_v33 = vpop.permute.xlu1 %1420 }
 0x628   : > { %v2085_v28 = vpop.eup %2084 }
 0x629   : > { %v1086_v29 = vmul.f32 %v2085_v28, %v2083_v21  ;;  %v2087_v30 = vpop.eup %2086 }
 0x62a   : > { %v1253_v31 = vmul.f32 %v2087_v30, %v2079_v13  ;;  %v2089_v32 = vpop.eup %2088 }
 0x62b   : > { %1909 = vmatmul.mubr.msk.f32.vlgmr.msra.gmra.mrb[8].mxu1 %vm835_vm2, %v1086_v29  ;;  %v1419_v34 = vmul.f32 %v2089_v32, %v2081_v17 }
 0x62c   : > { %1917 = vmatpush3.msra.mxu1 %v1255_v26  ;;  %1918 = vmatprep.mubr.msk.f32.mxu1 %vm2382_vm0, %v2383_v1 }
 0x62d   : > { %1926 = vmatprep.subr.mxu1 %v2383_v1 }
 0x62f   : > { %1919 = vmatmul.mubr.msk.f32.vlgmr.msra.gmra.mrb[10].mxu1 %vm835_vm2, %v1253_v31 }
 0x630   : > { %1927 = vmatpush3.msra.mxu1 %v1421_v33  ;;  %1928 = vmatprep.mubr.msk.f32.mxu1 %vm2382_vm0, %v2383_v1 }
 0x633   : > { %1929 = vmatmul.mubr.msk.f32.vlgmr.msra.gmra.mrb[12].mxu1 %vm835_vm2, %v1419_v34 }
 0x6fe   : > { %v1160_v41 = vpop.f32.mrb[8].mxu1 }
 0x6ff   : > { %1497 = vrot.lane.b32.xlu0 %v1160_v41, %s2387_s28  ;;  %v1910_v42 = vpop.f32.mrb[9].mxu1 }
 0x702   : > { %v1326_v43 = vpop.f32.mrb[10].mxu1 }
 0x703   : > { %1501 = vrot.lane.b32.xlu1 %v1326_v43, %s2388_s16  ;;  %v1920_v1 = vpop.f32.mrb[11].mxu1 }
 0x706   : > { %v1492_v44 = vpop.f32.mrb[12].mxu1 }
 0x707   : > { %1505 = vrot.lane.b32.xlu0 %v1492_v44, %s2389_s17  ;;  %v1930_v45 = vpop.f32.mrb[13].mxu1 }
 0x771   : > { %v1498_v46 = vpop.permute.xlu0 %1497 }
 0x772   : > { %v1508_v47 = vsel %vm835_vm2, %v2844_v62, %v1498_v46 }
 0x775   : > { %v1502_v0 = vpop.permute.xlu1 %1501 }
 0x776   : > { %v1510_v48 = vsel %vm1509_vm4, %v1508_v47, %v1502_v0 }
 0x779   : > { %v1506_v49 = vpop.permute.xlu0 %1505 }
 0x77a   : > { %v1512_v50 = vsel %vm1511_vm5, %v1510_v48, %v1506_v49 }
 0x77b   : > { %1940 = vmatmul.mubr.msk.f32.vlgmr.msra.gmra.mrb[8].mxu0 %vm589_vm1, %v1512_v50 }
 0x84e   : > { %v1593_v52 = vpop.f32.mrb[8].mxu0 }
 0x84f   : > { %v1594_v53 = vadd.f32 %v1816_v51, %v1593_v52  ;;  %v1941_v54 = vpop.f32.mrb[9].mxu0 }
 0x851   : > { %1597 = vst.msk [vmem:[%s570_s1] sm:$0xff] %vm589_vm1, %v1594_v53 }
 0x852   : > { %2305 = shalt.err (!%p2302_p10)
}
 0x853   : > { %s2306_s14 = scalar_lea.hbm %s2880_s24, 128  ;;  %s2310_s8 = scalar_lea.hbm %s3007_s15, 256 }
 0x854   : > { %p2307_p3 = scmp.ne.s32.totalorder %s2880_s24, %s2306_s14  ;;  %p2311_p0 = scmp.lt.u32.totalorder %s2880_s24, %s3007_s15 }
 0x855   : > { %p2312_p7 = scmp.lt.u32.totalorder %s2310_s8, %s2306_s14  ;;  %p2314_p13 = scmp.lt.u32.totalorder %s2306_s14, %s2880_s24 }
 0x856   : > { %p2308_p8 = pnand %p2307_p3, %p3008_p11 }
 0x857   : > { %p2313_p9 = por %p2312_p7, %p2311_p0 }
 0x858   : > { %p2309_p12 = pneg %p2308_p8 }
 0x859   : > { %p2315_p1 = por %p2314_p13, %p2313_p9 }
 0x85b   : > { %p2316_p6 = pnand %p2315_p1, %p2309_p12 }
 0x85d   : > { %2319 = shalt.err (!%p2316_p6)
}
 0x85e   : > { %1988 = dma.vmem_to_hbm [thread:$0]  (%p3008_p11), %s2882_s4, 128, %s2880_s24, %s1599_s18  }
 0x85f PF: > { %s3009_s16 = sld [smem:[#allocation20_spill]]  ;;  %s3010_s17 = sld [smem:[#allocation25_spill]] }
 0x860   : > { %s3011_s25 = sld [smem:[#allocation21_spill]] }
 0x865   : > { %s1624_s13 = sand.u32 1, %s3009_s16   ;;  %p3012_p5 = scmp.ne.s32.totalorder %s3010_s17, 0 }
 0x866   : > { %p3013_p2 = scmp.ge.s32.totalorder %s3011_s25, 2  ;;  %s1625_s26 = scalar_lea.sflag [#allocation4], %s1624_s13 }
 0x868   : > { %p2014_p4 = pnand %p3013_p2, %p3012_p5 }
 0x86a   : > { %2353 = dma.done.wait (!%p2014_p4), %s1625_s26, 128  }
 0x86b   : > { %2355 = vsyncadd (!%p2014_p4), %s1625_s26, 4294967168  ;;  %s3014_s24 = sld [smem:[#allocation22_spill]]  ;;  %s3015_s12 = sld [smem:[#allocation23_spill]] }
 0x86c   : > { %s3016_s21 = smov %s2362_s22  ;;  %s3017_s22 = smov %s2366_s23 }
 0x871   : > { %p30_p10 = scmp.ge.s32.totalorder %s3014_s24, 4   ;;  %s3018_s23 = smov %s3015_s12 }
 0x873   :  { %32 = sbr.rel (!%p30_p10) target bundleno = 18 (0x12), region = 156 }
 0x87a   :  { %1630 = vsyncpa [#allocation3], 1 }
 0x87b   :  { %1632 = vsyncpa [#allocation3 + $0x1], 1 }
 0x87c   :  { %1633 = vsyncpa [#allocation6], 1 }
 0x87d   :  { %1635 = vsyncpa [#allocation6 + $0x1], 1 }
 0x87e   :  { %1636 = vsyncpa [#allocation9], 1 }
 0x87f   :  { %1637 = vsyncpa [#allocation12], 1 }
 0x880   :  { %1638 = vsyncpa [#allocation4], 1 }
 0x881   :  { %1640 = vsyncpa [#allocation4 + $0x1], 1 }

</bundles_post_ra>
